<compile_context>
chip_gen: v7x
topology: tpu7x:2x2x1
jax: 0.10.0
libtpu: 0.0.40
codegen_flags: <defaults>
</compile_context>

<pallas_src>
import jax
import jax.numpy as jnp
from jax.experimental import pallas as pl
from jax.experimental.pallas import tpu as pltpu


def _sepconv_kernel(x_ref, w_ref, o_ref):
    # x_ref: (tm, Kpad)     pre-gathered input rows (incl. constant-1 bias col)
    # w_ref: (Kpad, WoCout) folded banded weight (incl. bias row), grid-invariant
    # o_ref: (tm, WoCout)   lane-dense output tile (last dim multiple of 128)
    o_ref[...] = jnp.dot(x_ref[...], w_ref[...],
                         preferred_element_type=jnp.float32).astype(o_ref.dtype)


def _tensorcores_per_chip() -> int:
    """Best-effort detection of TensorCores per JAX device (2 on v7x)."""
    try:
        kind = jax.devices()[0].device_kind.lower()
    except Exception:
        return 1
    return 2 if "v7" in kind else 1


def separable_conv2d(x_nchw, dw_w, dw_b, pw_w, pw_b, padding=(0, 0)):
    """Forward pass of SeparableConv2d (stride=1, dilation=1, groups=c_in).

    x_nchw : (N, C_in, H, W)
    dw_w   : (KH, KW, C_in)   depthwise weights (PyTorch: (C_in, 1, KH, KW))
    dw_b   : (C_in,)
    pw_w   : (C_in, C_out)    pointwise weights (PyTorch: (C_out, C_in, 1, 1))
    pw_b   : (C_out,)
    returns (N, C_out, H_out, W_out)
    """
    N, C, H, W = x_nchw.shape
    KH, KW, C_dw = dw_w.shape
    assert C_dw == C and pw_w.shape[0] == C, "depthwise/pointwise channel mismatch"
    C_out = pw_w.shape[1]
    ph, pw_pad = padding

    # --- layout plumbing: NCHW -> NHWC, zero-pad, fold channels into lanes ---
    x = jnp.transpose(x_nchw, (0, 2, 3, 1))
    x = jnp.pad(x, ((0, 0), (ph, ph), (pw_pad, pw_pad), (0, 0)))
    Hp, Wp = H + 2 * ph, W + 2 * pw_pad
    Ho, Wo = Hp - KH + 1, Wp - KW + 1
    WpC, WoCout = Wp * C, Wo * C_out
    x_flat = x.reshape(N, Hp, WpC)

    # --- pre-gather the KH row shifts along the contraction axis -------------
    # x_gath[n, h, kh*WpC + wp*C + c] = x_pad[n, h+kh, wp, c]
    K = KH * WpC
    Kpad = ((K + 1 + 127) // 128) * 128              # room for bias row, 128-aligned
    x_gath = jnp.concatenate([x_flat[:, kh:kh + Ho, :] for kh in range(KH)],
                             axis=-1)                 # (N, Ho, KH*WpC)
    ones_col = jnp.ones((N, Ho, 1), x_gath.dtype)     # bias carrier column
    zpad_x = jnp.zeros((N, Ho, Kpad - K - 1), x_gath.dtype)
    x_mat = jnp.concatenate([x_gath, ones_col, zpad_x], axis=-1)
    x_mat = x_mat.reshape(N * Ho, Kpad)               # batch folded into M

    # --- one-time weight folding (grid-invariant) -----------------------------
    # effective conv weight of the composed op: W_eff[kh,kw,c,o] = dw * pw
    w_eff = dw_w[:, :, :, None] * pw_w[None, None, :, :]        # (KH, KW, C, Cout)
    # banded weight: M[kh*WpC + wp*C + c, w*Cout + o] = W_eff[kh, wp-w, c, o]
    wp_idx = jnp.arange(Wp)
    w_idx = jnp.arange(Wo)
    kw_idx = wp_idx[:, None] - w_idx[None, :]                   # (Wp, Wo)
    valid = (kw_idx >= 0) & (kw_idx < KW)
    kw_safe = jnp.clip(kw_idx, 0, KW - 1)
    m = w_eff[:, kw_safe, :, :]                                 # (KH, Wp, Wo, C, Cout)
    m = m * valid[None, :, :, None, None].astype(w_eff.dtype)
    m = jnp.transpose(m, (0, 1, 3, 2, 4)).reshape(K, WoCout)    # kh-major = x_gath order

    # fold depthwise bias through the pointwise conv; append as a K row
    b_eff = pw_b + dw_b @ pw_w                                  # (Cout,)
    b_row = jnp.tile(b_eff, Wo).reshape(1, WoCout)
    zpad_w = jnp.zeros((Kpad - K - 1, WoCout), m.dtype)
    w_mat = jnp.concatenate([m, b_row.astype(m.dtype), zpad_w], axis=0)
    w_mat = w_mat.astype(x_mat.dtype)                           # (Kpad, WoCout)

    # --- grid: 1 step on single-TC v5e/v6e, 2 parallel M-blocks on v7x --------
    M = N * Ho
    m_blocks = 2 if (_tensorcores_per_chip() >= 2 and M % 16 == 0) else 1
    tm = M // m_blocks

    flops = 2 * M * Kpad * WoCout
    bytes_accessed = 4 * (M * Kpad + Kpad * WoCout + M * WoCout)

    out_mat = pl.pallas_call(
        _sepconv_kernel,
        out_shape=jax.ShapeDtypeStruct((M, WoCout), x_nchw.dtype),
        grid=(m_blocks,),
        in_specs=[
            pl.BlockSpec((tm, Kpad), lambda i: (i, 0)),
            # grid-invariant weight: constant index_map -> fetched once.
            # (pl.Buffered(1) would drop the second ~128 KiB buffer; irrelevant
            #  at this size, revisit for large C/Cout/W on v7x's 64 MiB VMEM.)
            pl.BlockSpec((Kpad, WoCout), lambda i: (0, 0)),
        ],
        out_specs=pl.BlockSpec((tm, WoCout), lambda i: (i, 0)),
        compiler_params=pltpu.CompilerParams(
            dimension_semantics=("parallel",)),
        cost_estimate=pl.CostEstimate(flops=flops, transcendentals=0,
                                      bytes_accessed=bytes_accessed),
    )(x_mat, w_mat)

    # --- layout plumbing back: (N*Ho, Wo*Cout) -> NCHW -------------------------
    out = out_mat.reshape(N, Ho, Wo, C_out)
    return jnp.transpose(out, (0, 3, 1, 2))


def _reference(x_nchw, dw_w, dw_b, pw_w, pw_b, padding):
    """Pure-JAX reference (lax conv) for correctness check."""
    N, C, H, W = x_nchw.shape
    KH, KW, _ = dw_w.shape
    C_out = pw_w.shape[1]
    dw_oihw = jnp.transpose(dw_w, (2, 0, 1))[:, None, :, :]     # (C, 1, KH, KW)
    y = jax.lax.conv_general_dilated(
        x_nchw, dw_oihw, window_strides=(1, 1),
        padding=((padding[0], padding[0]), (padding[1], padding[1])),
        feature_group_count=C,
        dimension_numbers=("NCHW", "OIHW", "NCHW"))
    y = y + dw_b[None, :, None, None]
    pw_oihw = jnp.transpose(pw_w, (1, 0))[:, :, None, None]     # (Cout, C, 1, 1)
    z = jax.lax.conv_general_dilated(
        y, pw_oihw, window_strides=(1, 1), padding="VALID",
        dimension_numbers=("NCHW", "OIHW", "NCHW"))
    return z + pw_b[None, :, None, None]


if __name__ == "__main__":
    # Module config: SeparableConv2d(c_in=4, c_out=8, kernel_size=(3,3), padding=(1,1))
    c_in, c_out = 4, 8
    kernel_size = (3, 3)
    padding = (1, 1)
    N, H, W = 2, 16, 16

    key = jax.random.PRNGKey(0)
    k_x, k_dw, k_dwb, k_pw, k_pwb = jax.random.split(key, 5)

    x = jax.random.normal(k_x, (N, c_in, H, W), dtype=jnp.float32)

    # Deterministic parameter init (shapes match nn.Conv2d parameters).
    fan_dw = kernel_size[0] * kernel_size[1]          # groups=c_in -> 1*KH*KW
    bound_dw = 1.0 / (fan_dw ** 0.5)
    dw_w = jax.random.uniform(k_dw, (kernel_size[0], kernel_size[1], c_in),
                              minval=-bound_dw, maxval=bound_dw, dtype=jnp.float32)
    dw_b = jax.random.uniform(k_dwb, (c_in,), minval=-bound_dw, maxval=bound_dw,
                              dtype=jnp.float32)
    bound_pw = 1.0 / (c_in ** 0.5)
    pw_w = jax.random.uniform(k_pw, (c_in, c_out), minval=-bound_pw, maxval=bound_pw,
                              dtype=jnp.float32)
    pw_b = jax.random.uniform(k_pwb, (c_out,), minval=-bound_pw, maxval=bound_pw,
                              dtype=jnp.float32)

    out = separable_conv2d(x, dw_w, dw_b, pw_w, pw_b, padding=padding)
    out = jax.block_until_ready(out)

    ref = _reference(x, dw_w, dw_b, pw_w, pw_b, padding)
    assert out.shape == (N, c_out, H, W), out.shape
    assert jnp.allclose(out, ref, atol=1e-4, rtol=1e-4), "mismatch vs reference"

    print("KERNEL_OK")
</pallas_src>

<mosaic_0001>
module attributes {stable_mosaic.version = 11 : i64} {
  func.func @_sepconv_kernel(%arg0: i32, %arg1: memref<32x256xf32, #tpu.memory_space<vmem>>, %arg2: memref<256x128xf32, #tpu.memory_space<vmem>>, %arg3: memref<32x128xf32, #tpu.memory_space<vmem>>) attributes {dimension_semantics = [#tpu.dimension_semantics<parallel>], iteration_bounds = array<i64: 1>, scalar_prefetch = 0 : i64, scratch_operands = 0 : i64, tpu.core_type = #tpu.core_type<tc>, window_params = [{transform_indices = @transform_0, window_bounds = array<i64: 32, 256>}, {pipeline_mode = #tpu.pipeline_mode<synchronous>, transform_indices = @transform_1, window_bounds = array<i64: 256, 128>}, {transform_indices = @transform_2, window_bounds = array<i64: 32, 128>}]} {
    %c0 = arith.constant 0 : index
    %c0_0 = arith.constant 0 : index
    %0 = vector.load %arg1[%c0, %c0_0] : memref<32x256xf32, #tpu.memory_space<vmem>>, vector<32x256xf32>
    %c0_1 = arith.constant 0 : index
    %c0_2 = arith.constant 0 : index
    %1 = vector.load %arg2[%c0_1, %c0_2] : memref<256x128xf32, #tpu.memory_space<vmem>>, vector<256x128xf32>
    %cst = arith.constant dense<0.000000e+00> : vector<32x128xf32>
    %2 = tpu.matmul %0, %1, %cst {dimension_numbers = #tpu.dot_dimension_numbers<[1], [0], [0], [1], [0, 0, 1, 1], [], []>} : vector<32x256xf32>, vector<256x128xf32>, vector<32x128xf32> -> vector<32x128xf32>
    %c0_3 = arith.constant 0 : index
    %c0_4 = arith.constant 0 : index
    %3 = vector.load %arg3[%c0_3, %c0_4] : memref<32x128xf32, #tpu.memory_space<vmem>>, vector<32x128xf32>
    tpu.vector_store %arg3[%c0_3, %c0_4], %2 {strides = array<i32>} : memref<32x128xf32, #tpu.memory_space<vmem>>, vector<32x128xf32>,
    return
  }
  func.func @transform_0(%arg0: i32) -> (i32, i32) {
    %c0_i32 = arith.constant 0 : i32
    %c0_i32_0 = arith.constant 0 : i32
    return %arg0, %c0_i32 : i32, i32
  }
  func.func @transform_1(%arg0: i32) -> (i32, i32) {
    %c0_i32 = arith.constant 0 : i32
    %c0_i32_0 = arith.constant 0 : i32
    %c0_i32_1 = arith.constant 0 : i32
    return %c0_i32, %c0_i32_0 : i32, i32
  }
  func.func @transform_2(%arg0: i32) -> (i32, i32) {
    %c0_i32 = arith.constant 0 : i32
    %c0_i32_0 = arith.constant 0 : i32
    return %arg0, %c0_i32 : i32, i32
  }
}

</mosaic_0001>

<bundles_post_ra>
// kernel: tpu_custom_call.1
= control target key start
LH: loop header
LB: loop body
LE: loop exit
PB: predicated region body
PF: predicated region fallthrough
CT: control target
= control target key end

     0   :  { %7 = vsyncpa [#allocation3], 0  ;;  %s422_s0 = inlined_call_operand.hbm [shape: f32[32,256], index: 0, kind: input, shape index: {}]   ;;  %s423_s1 = inlined_call_operand.hbm [shape: f32[256,128], index: 1, kind: input, shape index: {}]   ;;  %s424_s2 = inlined_call_operand.hbm [shape: f32[32,128], index: 2, kind: output, shape index: {}]  }
   0x1   :  { %8 = vsyncpa [#allocation6], 0 }
   0x2   :  { %9 = vsyncpa [#allocation4], 0  ;;  %s358_s9 = smov [#allocation2]   ;;  %s286_s13 = scalar_lea.hbm %s422_s0, 1024 }
   0x3   :  { %s15_s10 = sshll.u32 %s358_s9, 4  ;;  %p287_p0 = scmp.ne.s32.totalorder %s422_s0, %s286_s13  ;;  %s16_s10 = int_to_ptr.vmem [resolvable:$true] %s15_s10 }
   0x4   :  { %p290_p1 = scmp.lt.u32.totalorder %s286_s13, %s422_s0 }
   0x6   :  { %p292_p2 = pnand %p290_p1, %p287_p0 }
   0x8   :  { %295 = shalt.err (!%p292_p2)
}
   0x9   :  { %s296_s18 = scalar_lea.vmem %s16_s10, 1024  ;;  %p301_p4 = scmp.lt.s32.totalorder %s16_s10, %s16_s10 }
   0xa   :  { %p297_p3 = scmp.ne.s32.totalorder %s16_s10, %s296_s18  ;;  %p302_p5 = scmp.lt.s32.totalorder %s296_s18, %s296_s18 }
   0xc   :  { %p303_p6 = por %p302_p5, %p301_p4 }
   0xe   :  { %p304_p7 = pnand %p303_p6, %p297_p3 }
  0x10   :  { %307 = shalt.err (!%p304_p7)
}
  0x11   :  { %s359_s19 = smov 256   ;;  %s360_s20 = smov 16  }
  0x12   :  { %21 = dma.hbm_to_vmem [thread:$0]  %s422_s0, 1024, %s16_s10, [#allocation3], %s359_s19, %s359_s19, %s360_s20  }
  0x13   :  { %s361_s23 = smov [#allocation5]   ;;  %s308_s27 = scalar_lea.hbm %s423_s1, 4096 }
  0x14   :  { %s27_s24 = sshll.u32 %s361_s23, 4  ;;  %p309_p8 = scmp.ne.s32.totalorder %s423_s1, %s308_s27  ;;  %s28_s24 = int_to_ptr.vmem [resolvable:$true] %s27_s24 }
  0x15   :  { %p312_p9 = scmp.lt.u32.totalorder %s308_s27, %s423_s1 }
  0x17   :  { %p314_p10 = pnand %p312_p9, %p309_p8 }
  0x19   :  { %317 = shalt.err (!%p314_p10)
}
  0x1a   :  { %s318_s4 = scalar_lea.vmem %s28_s24, 4096  ;;  %p323_p12 = scmp.lt.s32.totalorder %s28_s24, %s28_s24 }
  0x1b   :  { %p319_p11 = scmp.ne.s32.totalorder %s28_s24, %s318_s4  ;;  %p324_p13 = scmp.lt.s32.totalorder %s318_s4, %s318_s4 }
  0x1d   :  { %p325_p0 = por %p324_p13, %p323_p12 }
  0x1f   :  { %p326_p1 = pnand %p325_p0, %p319_p11 }
  0x21   :  { %329 = shalt.err (!%p326_p1)
}
  0x22   :  { %s362_s0 = smov 128   ;;  %s363_s5 = smov 8  }
  0x23   :  { %33 = dma.hbm_to_vmem [thread:$0]  %s423_s1, 4096, %s28_s24, [#allocation6], %s362_s0, %s362_s0, %s363_s5  }
  0x24   :  { %352 = dma.done.wait [#allocation3], 1024  }
  0x25   :  { %353 = vsyncadd [#allocation3], 4294966272 }
  0x26   :  { %354 = dma.done.wait [#allocation6], 4096  }
  0x27   :  { %355 = vsyncadd [#allocation6], 4294963200  ;;  %v64_v0 = vld [vmem:[#allocation5 + $0x80] sm:$0xff]  ;;  %v65_v1 = vld [vmem:[#allocation5 + $0x88] sm:$0xff]  ;;  %s364_s1 = smov [#allocation7]  }
  0x28   :  { %v48_v2 = vld [vmem:[#allocation5] sm:$0xff]  ;;  %v231_v3 = vpack.c.bf16 %v65_v1, %v64_v0  ;;  %v49_v4 = vld [vmem:[#allocation5 + $0x8] sm:$0xff]  ;;  %v66_v5 = vld [vmem:[#allocation5 + $0x90] sm:$0xff]  ;;  %s174_s8 = sshll.u32 %s364_s1, 4  ;;  %s175_s8 = int_to_ptr.vmem [resolvable:$true] %s174_s8 }
  0x29   :  { %v67_v6 = vld [vmem:[#allocation5 + $0x98] sm:$0xff]  ;;  %v233_v7 = vpack.c.bf16 %v49_v4, %v48_v2  ;;  %v50_v9 = vld [vmem:[#allocation5 + $0x10] sm:$0xff]  ;;  %v68_v11 = vld [vmem:[#allocation5 + $0xa0] sm:$0xff]  ;;  %s330_s9 = scalar_lea.vmem %s175_s8, 512  ;;  %p335_p3 = scmp.lt.s32.totalorder %s175_s8, %s175_s8 }
  0x2a   :  { %v235_v8 = vpack.c.bf16 %v67_v6, %v66_v5  ;;  %v51_v10 = vld [vmem:[#allocation5 + $0x18] sm:$0xff]  ;;  %232 = vmatprep.subr.bf16.mxu0 %v231_v3  ;;  %263 = vmatprep.subr.bf16.mxu1 %v231_v3  ;;  %v69_v12 = vld [vmem:[#allocation5 + $0xa8] sm:$0xff]  ;;  %v52_v15 = vld [vmem:[#allocation5 + $0x20] sm:$0xff]  ;;  %p331_p2 = scmp.ne.s32.totalorder %s175_s8, %s330_s9  ;;  %p336_p4 = scmp.lt.s32.totalorder %s330_s9, %s330_s9 }
  0x2b   :  { %234 = vmatpush3.bf16.msra.mxu0 %v233_v7  ;;  %271 = vmatpush3.bf16.msra.mxu1 %v233_v7  ;;  %v237_v13 = vpack.c.bf16 %v51_v10, %v50_v9  ;;  %v239_v14 = vpack.c.bf16 %v69_v12, %v68_v11  ;;  %v53_v16 = vld [vmem:[#allocation5 + $0x28] sm:$0xff]  ;;  %v70_v17 = vld [vmem:[#allocation5 + $0xb0] sm:$0xff]  ;;  %v71_v18 = vld [vmem:[#allocation5 + $0xb8] sm:$0xff] }
  0x2c   :  { %236 = vmatprep.subr.bf16.mxu0 %v235_v8  ;;  %264 = vmatprep.subr.bf16.mxu1 %v235_v8  ;;  %v241_v19 = vpack.c.bf16 %v53_v16, %v52_v15  ;;  %v243_v20 = vpack.c.bf16 %v71_v18, %v70_v17  ;;  %v54_v21 = vld [vmem:[#allocation5 + $0x30] sm:$0xff]  ;;  %v55_v22 = vld [vmem:[#allocation5 + $0x38] sm:$0xff]  ;;  %v72_v23 = vld [vmem:[#allocation5 + $0xc0] sm:$0xff]  ;;  %p337_p5 = por %p336_p4, %p335_p3 }
  0x2d   :  { %v73_v24 = vld [vmem:[#allocation5 + $0xc8] sm:$0xff]  ;;  %v245_v27 = vpack.c.bf16 %v55_v22, %v54_v21  ;;  %v56_v29 = vld [vmem:[#allocation5 + $0x40] sm:$0xff]  ;;  %v74_v31 = vld [vmem:[#allocation5 + $0xd0] sm:$0xff] }
  0x2e   :  { %v41_v25 = vld [vmem:[#allocation2 + $0x8] sm:$0xff]  ;;  %v247_v28 = vpack.c.bf16 %v73_v24, %v72_v23  ;;  %v75_v32 = vld [vmem:[#allocation5 + $0xd8] sm:$0xff]  ;;  %v58_v35 = vld [vmem:[#allocation5 + $0x50] sm:$0xff]  ;;  %p338_p6 = pnand %p337_p5, %p331_p2 }
  0x2f   :  { %238 = vmatpush3.bf16.msra.mxu0 %v237_v13  ;;  %272 = vmatpush3.bf16.msra.mxu1 %v237_v13  ;;  %v45_v26 = vld [vmem:[#allocation2 + $0x28] sm:$0xff]  ;;  %v251_v34 = vpack.c.bf16 %v75_v32, %v74_v31  ;;  %v59_v36 = vld [vmem:[#allocation5 + $0x58] sm:$0xff]  ;;  %v76_v37 = vld [vmem:[#allocation5 + $0xe0] sm:$0xff] }
  0x30   :  { %240 = vmatprep.subr.bf16.mxu0 %v239_v14  ;;  %265 = vmatprep.subr.bf16.mxu1 %v239_v14  ;;  %v57_v30 = vld [vmem:[#allocation5 + $0x48] sm:$0xff]  ;;  %v253_v39 = vpack.c.bf16 %v59_v36, %v58_v35  ;;  %v60_v41 = vld [vmem:[#allocation5 + $0x60] sm:$0xff]  ;;  %v78_v43 = vld [vmem:[#allocation5 + $0xf0] sm:$0xff] }
  0x31   :  { %144 = vmatprep.mubr.f32.mxu0 %v41_v25  ;;  %154 = vmatprep.mubr.f32.mxu1 %v45_v26  ;;  %v249_v33 = vpack.c.bf16 %v57_v30, %v56_v29  ;;  %v77_v38 = vld [vmem:[#allocation5 + $0xe8] sm:$0xff]  ;;  %v79_v44 = vld [vmem:[#allocation5 + $0xf8] sm:$0xff]  ;;  %v62_v47 = vld [vmem:[#allocation5 + $0x70] sm:$0xff] }
  0x32   :  { %v255_v40 = vpack.c.bf16 %v77_v38, %v76_v37  ;;  %v61_v42 = vld [vmem:[#allocation5 + $0x68] sm:$0xff]  ;;  %v259_v46 = vpack.c.bf16 %v79_v44, %v78_v43  ;;  %v63_v48 = vld [vmem:[#allocation5 + $0x78] sm:$0xff]  ;;  %v40_v50 = vld [vmem:[#allocation2] sm:$0xff] }
  0x33   :  { %242 = vmatpush3.bf16.msra.mxu0 %v241_v19  ;;  %273 = vmatpush3.bf16.msra.mxu1 %v241_v19  ;;  %v257_v45 = vpack.c.bf16 %v61_v42, %v60_v41  ;;  %v261_v49 = vpack.c.bf16 %v63_v48, %v62_v47  ;;  %v44_v51 = vld [vmem:[#allocation2 + $0x20] sm:$0xff]  ;;  %v43_v52 = vld [vmem:[#allocation2 + $0x18] sm:$0xff]  ;;  %v42_v54 = vld [vmem:[#allocation2 + $0x10] sm:$0xff] }
  0x34   :  { %244 = vmatprep.subr.bf16.mxu0 %v243_v20  ;;  %266 = vmatprep.subr.bf16.mxu1 %v243_v20  ;;  %v47_v53 = vld [vmem:[#allocation2 + $0x38] sm:$0xff]  ;;  %v46_v55 = vld [vmem:[#allocation2 + $0x30] sm:$0xff] }
  0x37   :  { %246 = vmatpush3.bf16.msra.mxu0 %v245_v27  ;;  %274 = vmatpush3.bf16.msra.mxu1 %v245_v27 }
  0x38   :  { %248 = vmatprep.subr.bf16.mxu0 %v247_v28  ;;  %267 = vmatprep.subr.bf16.mxu1 %v247_v28 }
  0x3b   :  { %250 = vmatpush3.bf16.msra.mxu0 %v249_v33  ;;  %275 = vmatpush3.bf16.msra.mxu1 %v249_v33 }
  0x3c   :  { %252 = vmatprep.subr.bf16.mxu0 %v251_v34  ;;  %268 = vmatprep.subr.bf16.mxu1 %v251_v34 }
  0x3f   :  { %254 = vmatpush3.bf16.msra.mxu0 %v253_v39  ;;  %276 = vmatpush3.bf16.msra.mxu1 %v253_v39 }
  0x40   :  { %256 = vmatprep.subr.bf16.mxu0 %v255_v40  ;;  %269 = vmatprep.subr.bf16.mxu1 %v255_v40 }
  0x43   :  { %258 = vmatpush3.bf16.msra.mxu0 %v257_v45  ;;  %277 = vmatpush3.bf16.msra.mxu1 %v257_v45 }
  0x44   :  { %260 = vmatprep.subr.bf16.mxu0 %v259_v46  ;;  %270 = vmatprep.subr.bf16.mxu1 %v259_v46 }
  0x47   :  { %262 = vmatpush3.bf16.msra.mxu0 %v261_v49  ;;  %278 = vmatpush3.bf16.msra.mxu1 %v261_v49 }
  0x4a   :  { %145 = vmatmul.mubr.f32.vlgmr.msra.gmra.mrb[0].mxu0 %v40_v50  ;;  %155 = vmatmul.mubr.f32.vlgmr.msra.gmra.mrb[0].mxu1 %v44_v51 }
  0x4b   :  { %149 = vmatprep.mubr.f32.mxu0 %v43_v52  ;;  %159 = vmatprep.mubr.f32.mxu1 %v47_v53 }
  0x4e   :  { %150 = vmatmul.mubr.f32.gmra.mrb[2].mxu0 %v42_v54  ;;  %160 = vmatmul.mubr.f32.gmra.mrb[2].mxu1 %v46_v55 }
 0x11d   :  { %v219_v56 = vpop.f32.mrb[0].mxu0  ;;  %v225_v57 = vpop.f32.mrb[0].mxu1 }
 0x11e   :  { %v220_v58 = vpop.f32.mrb[1].mxu0  ;;  %v226_v59 = vpop.f32.mrb[1].mxu1 }
 0x11f   :  { %v221_v60 = vadd.f32 %v220_v58, %v219_v56  ;;  %v227_v61 = vadd.f32 %v226_v59, %v225_v57 }
 0x121   :  { %165 = vst [vmem:[#allocation7] sm:$0xff] %v221_v60  ;;  %167 = vst [vmem:[#allocation7 + $0x10] sm:$0xff] %v227_v61  ;;  %v222_v62 = vpop.f32.mrb[2].mxu0  ;;  %v228_v63 = vpop.f32.mrb[2].mxu1 }
 0x122   :  { %v223_v0 = vpop.f32.mrb[3].mxu0  ;;  %v229_v1 = vpop.f32.mrb[3].mxu1 }
 0x123   :  { %v224_v2 = vadd.f32 %v223_v0, %v222_v62  ;;  %v230_v3 = vadd.f32 %v229_v1, %v228_v63 }
 0x125   :  { %166 = vst [vmem:[#allocation7 + $0x8] sm:$0xff] %v224_v2  ;;  %168 = vst [vmem:[#allocation7 + $0x18] sm:$0xff] %v230_v3 }
 0x126   :  { %341 = shalt.err (!%p338_p6)
}
 0x127   :  { %s342_s12 = scalar_lea.hbm %s424_s2, 512 }
 0x128   :  { %p343_p7 = scmp.ne.s32.totalorder %s424_s2, %s342_s12  ;;  %p346_p8 = scmp.lt.u32.totalorder %s342_s12, %s424_s2 }
 0x12a   :  { %p348_p9 = pnand %p346_p8, %p343_p7 }
 0x12c   :  { %351 = shalt.err (!%p348_p9)
}
 0x12d   :  { %180 = dma.vmem_to_hbm [thread:$0]  %s175_s8, 512, %s424_s2, [#allocation4], %s362_s0, %s362_s0, %s363_s5  }
 0x12e   :  { %356 = dma.done.wait [#allocation4], 512  }
 0x12f   :  { %357 = vsyncadd [#allocation4], 4294966784 }
 0x130   :  { %184 = vsyncpa [#allocation3], 1 }
 0x131   :  { %185 = vsyncpa [#allocation6], 1 }
 0x132   :  { %186 = vsyncpa [#allocation4], 1 }

</bundles_post_ra>
